<compile_context>
chip_gen: v7x
topology: tpu7x:2x2x1
jax: 0.10.0
libtpu: 0.0.40
codegen_flags: <defaults>
</compile_context>

<pallas_src>
import jax
import jax.numpy as jnp
from jax.experimental import pallas as pl
from jax.experimental.pallas import tpu as pltpu


# ---------------------------------------------------------------------------
# Generation-aware budgets
# ---------------------------------------------------------------------------
def _vmem_budget():
    """Return (vmem_limit_bytes, max_per_step_block_bytes) for this chip."""
    try:
        vmem = pltpu.get_tpu_info().vmem_capacity_bytes
    except Exception:  # be conservative (v7x-sized) if the query is unavailable
        vmem = 64 * 1024 * 1024
    if vmem >= 128 * 1024 * 1024:           # v5e / v6e
        return 96 * 1024 * 1024, 16 * 1024 * 1024
    return 48 * 1024 * 1024, 12 * 1024 * 1024   # v7x (64 MiB physical VMEM)


# ---------------------------------------------------------------------------
# Kernels
# ---------------------------------------------------------------------------
def _add_kernel(x0_ref, x1_ref, o_ref):
    # Elementwise ADD with in-kernel type promotion (VPU work hidden under DMA).
    o_ref[...] = x0_ref[...].astype(o_ref.dtype) + x1_ref[...].astype(o_ref.dtype)


def _make_cat_dma_kernel(channel_offsets, channel_sizes):
    """Pure-DMA channel concat: stream each HBM input into its channel slice
    of the HBM output.  No VMEM / vreg round trip, no unaligned stores."""
    num_inputs = len(channel_sizes)

    def kernel(*refs):
        in_refs = refs[:num_inputs]
        o_ref = refs[num_inputs]
        sem = refs[num_inputs + 1]
        copies = []
        for idx in range(num_inputs):  # static Python loop (shapes are static)
            dst = o_ref.at[:, pl.ds(channel_offsets[idx], channel_sizes[idx]), :]
            cp = pltpu.make_async_copy(in_refs[idx], dst, sem.at[idx])
            cp.start()
            copies.append(cp)
        for cp in copies:
            cp.wait()

    return kernel


# ---------------------------------------------------------------------------
# Tiling helpers
# ---------------------------------------------------------------------------
def _sublane_align(*dtypes):
    # Sub-32-bit dtypes pack along sublanes: keep the second-to-last block dim
    # a multiple of the packing factor (8 f32 / 16 bf16 / 32 int8).
    min_itemsize = min(jnp.dtype(d).itemsize for d in dtypes)
    return max(8, 32 // max(1, min_itemsize))


def _pick_lane_width(total, align, max_lane=2048):
    """Largest multiple of 128 (<= max_lane) dividing `total`, preferring one
    whose row count (total // L) is a multiple of the sublane packing factor.
    Returns None if no multiple of 128 divides `total`."""
    best_div = None
    for lane in range(max_lane, 127, -128):
        if total % lane:
            continue
        if best_div is None:
            best_div = lane
        if (total // lane) % align == 0:
            return lane
    return best_div


def _pick_row_tile(num_rows, bytes_per_row, align, max_block_bytes):
    tile = max(1, max_block_bytes // max(1, bytes_per_row))
    tile = min(tile, num_rows)
    # Ensure >= 2 grid steps on big-enough arrays so v7x megacore can shard.
    if tile == num_rows and num_rows >= 2 * align:
        tile = (num_rows + 1) // 2
    if tile < num_rows:
        tile = max(align, (tile // align) * align)
        tile = min(tile, num_rows)
    return tile


# ---------------------------------------------------------------------------
# ADD path
# ---------------------------------------------------------------------------
def _combine_add(x0, x1, out_dtype, vmem_limit, max_block):
    assert x0.shape == x1.shape, "ADD requires matching shapes"
    n, c, h, w = x0.shape
    total = n * c * h * w
    align = _sublane_align(x0.dtype, x1.dtype, out_dtype)

    lane = _pick_lane_width(total, align)
    if lane is None:
        # No 128-multiple divides the element count: fall back to (N*C, H*W).
        # The masked lane tail is inherent to the shape in that case.
        rows, lane = n * c, h * w
    else:
        rows = total // lane

    a = x0.reshape(rows, lane)   # free view of a contiguous NCHW array
    b = x1.reshape(rows, lane)
    out_itemsize = jnp.dtype(out_dtype).itemsize
    bytes_per_row = lane * (a.dtype.itemsize + b.dtype.itemsize + out_itemsize)
    row_tile = _pick_row_tile(rows, bytes_per_row, align, max_block)
    grid = (pl.cdiv(rows, row_tile),)

    cost = pl.CostEstimate(
        flops=total,
        transcendentals=0,
        bytes_accessed=a.nbytes + b.nbytes + total * out_itemsize,
    )

    out = pl.pallas_call(
        _add_kernel,
        out_shape=jax.ShapeDtypeStruct((rows, lane), out_dtype),
        grid_spec=pltpu.PrefetchScalarGridSpec(
            num_scalar_prefetch=0,
            grid=grid,
            in_specs=[
                pl.BlockSpec((row_tile, lane), lambda i: (i, 0)),
                pl.BlockSpec((row_tile, lane), lambda i: (i, 0)),
            ],
            out_specs=pl.BlockSpec((row_tile, lane), lambda i: (i, 0)),
        ),
        compiler_params=pltpu.CompilerParams(
            dimension_semantics=("parallel",),
            vmem_limit_bytes=vmem_limit,
        ),
        cost_estimate=cost,
    )(a, b)
    return out.reshape(n, c, h, w)


# ---------------------------------------------------------------------------
# CONCAT path (channel dim = 1), arbitrary number of inputs like torch.cat
# ---------------------------------------------------------------------------
def _combine_cat(xs, out_dtype):
    n, _, h, w = xs[0].shape
    hw = h * w
    for x in xs:
        assert x.shape[0] == n and x.shape[2:] == (h, w), "CONCAT: N/H/W must match"

    channels = [x.shape[1] for x in xs]
    offsets = [0]
    for ci in channels[:-1]:
        offsets.append(offsets[-1] + ci)
    out_c = sum(channels)

    # DMA is a bitwise copy, so cast (no-op in the common same-dtype case) and
    # flatten H,W into one lane-dense axis (free views of contiguous arrays).
    ins = [x.astype(out_dtype).reshape(n, ci, hw) for x, ci in zip(xs, channels)]

    out_bytes = n * out_c * hw * jnp.dtype(out_dtype).itemsize
    cost = pl.CostEstimate(flops=0, transcendentals=0, bytes_accessed=2 * out_bytes)

    out = pl.pallas_call(
        _make_cat_dma_kernel(tuple(offsets), tuple(channels)),
        out_shape=jax.ShapeDtypeStruct((n, out_c, hw), out_dtype),
        in_specs=[pl.BlockSpec(memory_space=pl.ANY)] * len(ins),
        out_specs=pl.BlockSpec(memory_space=pl.ANY),
        scratch_shapes=[pltpu.SemaphoreType.DMA((len(ins),))],
        cost_estimate=cost,
    )(*ins)
    return out.reshape(n, out_c, h, w)


# ---------------------------------------------------------------------------
# Public wrapper — Pallas equivalent of cvm Combine.forward(x)
# ---------------------------------------------------------------------------
def combine(xs, method: str = "ADD"):
    """xs: sequence of NCHW arrays.
      ADD    -> xs[0] + xs[1]                  (shapes must match)
      CONCAT -> concatenate along channel dim  (dim=1), any number of inputs
    """
    assert method in ("ADD", "CONCAT")
    xs = list(xs)
    vmem_limit, max_block = _vmem_budget()
    if method == "ADD":
        assert len(xs) >= 2
        out_dtype = jnp.result_type(xs[0].dtype, xs[1].dtype)
        return _combine_add(xs[0], xs[1], out_dtype, vmem_limit, max_block)
    out_dtype = jnp.result_type(*[x.dtype for x in xs])
    return _combine_cat(xs, out_dtype)


# ---------------------------------------------------------------------------
# Demo / check
# ---------------------------------------------------------------------------
if __name__ == "__main__":
    key = jax.random.PRNGKey(0)
    k0, k1, k2, k3 = jax.random.split(key, 4)

    # Small shapes consistent with an NCHW conv-feature combine.
    n, c, h, w = 2, 4, 16, 16
    x0 = jax.random.normal(k0, (n, c, h, w), dtype=jnp.float32)
    x1 = jax.random.normal(k1, (n, c, h, w), dtype=jnp.float32)

    # ADD path (lane-flattened layout)
    y_add = jax.block_until_ready(combine([x0, x1], method="ADD"))
    assert y_add.shape == (n, c, h, w)
    assert jnp.allclose(y_add, x0 + x1, atol=1e-6), "ADD mismatch"

    # ADD path with mixed dtypes (exercises in-kernel promotion)
    x1_bf16 = x1.astype(jnp.bfloat16)
    y_mixed = jax.block_until_ready(combine([x0, x1_bf16], method="ADD"))
    ref_mixed = x0 + x1_bf16.astype(jnp.float32)
    assert y_mixed.dtype == jnp.float32
    assert jnp.allclose(y_mixed, ref_mixed, atol=1e-6), "mixed-dtype ADD mismatch"

    # ADD path with H*W not a multiple of 128 (exercises the fallback layout)
    a7 = jax.random.normal(k2, (n, c, 7, 7), dtype=jnp.float32)
    b7 = jax.random.normal(k3, (n, c, 7, 7), dtype=jnp.float32)
    y7 = jax.block_until_ready(combine([a7, b7], method="ADD"))
    assert jnp.allclose(y7, a7 + b7, atol=1e-6), "fallback ADD mismatch"

    # CONCAT path (channel dim = 1), unequal channel counts (pure-DMA concat)
    x2 = jax.random.normal(k2, (n, 2 * c, h, w), dtype=jnp.float32)
    y_cat = jax.block_until_ready(combine([x0, x2], method="CONCAT"))
    assert y_cat.shape == (n, 3 * c, h, w)
    assert jnp.allclose(y_cat, jnp.concatenate([x0, x2], axis=1)), "CONCAT mismatch"

    # CONCAT with three inputs (torch.cat takes the full list)
    x3 = jax.random.normal(k3, (n, 6, h, w), dtype=jnp.float32)
    y_cat3 = jax.block_until_ready(combine([x0, x2, x3], method="CONCAT"))
    assert y_cat3.shape == (n, c + 2 * c + 6, h, w)
    assert jnp.allclose(y_cat3, jnp.concatenate([x0, x2, x3], axis=1)), "3-way CONCAT mismatch"

    print("KERNEL_OK")
</pallas_src>

<mosaic_0001>
module attributes {stable_mosaic.version = 11 : i64} {
  func.func @_add_kernel(%arg0: i32, %arg1: memref<8x256xf32, #tpu.memory_space<vmem>>, %arg2: memref<8x256xf32, #tpu.memory_space<vmem>>, %arg3: memref<8x256xf32, #tpu.memory_space<vmem>>) attributes {dimension_semantics = [#tpu.dimension_semantics<parallel>], iteration_bounds = array<i64: 1>, scalar_prefetch = 0 : i64, scratch_operands = 0 : i64, tpu.core_type = #tpu.core_type<tc>, window_params = [{transform_indices = @transform_0, window_bounds = array<i64: 8, 256>}, {transform_indices = @transform_1, window_bounds = array<i64: 8, 256>}, {transform_indices = @transform_2, window_bounds = array<i64: 8, 256>}]} {
    %c0 = arith.constant 0 : index
    %c0_0 = arith.constant 0 : index
    %0 = vector.load %arg1[%c0, %c0_0] : memref<8x256xf32, #tpu.memory_space<vmem>>, vector<8x256xf32>
    %c0_1 = arith.constant 0 : index
    %c0_2 = arith.constant 0 : index
    %1 = vector.load %arg2[%c0_1, %c0_2] : memref<8x256xf32, #tpu.memory_space<vmem>>, vector<8x256xf32>
    %2 = arith.addf %0, %1 : vector<8x256xf32>
    %c0_3 = arith.constant 0 : index
    %c0_4 = arith.constant 0 : index
    %3 = vector.load %arg3[%c0_3, %c0_4] : memref<8x256xf32, #tpu.memory_space<vmem>>, vector<8x256xf32>
    tpu.vector_store %arg3[%c0_3, %c0_4], %2 {strides = array<i32>} : memref<8x256xf32, #tpu.memory_space<vmem>>, vector<8x256xf32>,
    return
  }
  func.func @transform_0(%arg0: i32) -> (i32, i32) {
    %c0_i32 = arith.constant 0 : i32
    %c0_i32_0 = arith.constant 0 : i32
    return %arg0, %c0_i32 : i32, i32
  }
  func.func @transform_1(%arg0: i32) -> (i32, i32) {
    %c0_i32 = arith.constant 0 : i32
    %c0_i32_0 = arith.constant 0 : i32
    return %arg0, %c0_i32 : i32, i32
  }
  func.func @transform_2(%arg0: i32) -> (i32, i32) {
    %c0_i32 = arith.constant 0 : i32
    %c0_i32_0 = arith.constant 0 : i32
    return %arg0, %c0_i32 : i32, i32
  }
}

</mosaic_0001>

<bundles_post_ra>
// kernel: tpu_custom_call.1
= control target key start
LH: loop header
LB: loop body
LE: loop exit
PB: predicated region body
PF: predicated region fallthrough
CT: control target
= control target key end

     0   :  { %7 = vsyncpa [#allocation3], 0  ;;  %s189_s0 = inlined_call_operand.hbm [shape: f32[8,256], index: 0, kind: input, shape index: {}]   ;;  %s190_s1 = inlined_call_operand.hbm [shape: f32[8,256], index: 1, kind: input, shape index: {}]   ;;  %s191_s2 = inlined_call_operand.hbm [shape: f32[8,256], index: 2, kind: output, shape index: {}]  }
   0x1   :  { %8 = vsyncpa [#allocation6], 0 }
   0x2   :  { %9 = vsyncpa [#allocation4], 0  ;;  %s135_s9 = smov [#allocation2]   ;;  %s136_s11 = smov [#allocation5]  }
   0x3   :  { %s16_s10 = sshll.u32 %s135_s9, 4  ;;  %s26_s12 = sshll.u32 %s136_s11, 4  ;;  %s17_s10 = int_to_ptr.vmem [resolvable:$true] %s16_s10  ;;  %s27_s12 = int_to_ptr.vmem [resolvable:$true] %s26_s12 }
   0x4   :  { %s63_s15 = scalar_lea.hbm %s189_s0, 256 }
   0x5   :  { %p64_p0 = scmp.ne.s32.totalorder %s189_s0, %s63_s15  ;;  %p67_p1 = scmp.lt.u32.totalorder %s63_s15, %s189_s0 }
   0x7   :  { %p69_p2 = pnand %p67_p1, %p64_p0 }
   0x9   :  { %72 = shalt.err (!%p69_p2)
}
   0xa   :  { %s73_s20 = scalar_lea.vmem %s17_s10, 256  ;;  %p78_p4 = scmp.lt.s32.totalorder %s17_s10, %s17_s10 }
   0xb   :  { %p74_p3 = scmp.ne.s32.totalorder %s17_s10, %s73_s20  ;;  %p79_p5 = scmp.lt.s32.totalorder %s73_s20, %s73_s20 }
   0xd   :  { %p80_p6 = por %p79_p5, %p78_p4 }
   0xf   :  { %p81_p7 = pnand %p80_p6, %p74_p3 }
  0x11   :  { %84 = shalt.err (!%p81_p7)
}
  0x12   :  { %19 = dma.hbm_to_vmem [thread:$0]  %s189_s0, 256, %s17_s10, [#allocation3]  }
  0x13   :  { %s85_s25 = scalar_lea.hbm %s190_s1, 256 }
  0x14   :  { %p86_p8 = scmp.ne.s32.totalorder %s190_s1, %s85_s25  ;;  %p89_p9 = scmp.lt.u32.totalorder %s85_s25, %s190_s1 }
  0x16   :  { %p91_p10 = pnand %p89_p9, %p86_p8 }
  0x18   :  { %94 = shalt.err (!%p91_p10)
}
  0x19   :  { %s95_s30 = scalar_lea.vmem %s27_s12, 256  ;;  %p100_p12 = scmp.lt.s32.totalorder %s27_s12, %s27_s12 }
  0x1a   :  { %p96_p11 = scmp.ne.s32.totalorder %s27_s12, %s95_s30  ;;  %p101_p13 = scmp.lt.s32.totalorder %s95_s30, %s95_s30 }
  0x1c   :  { %p102_p0 = por %p101_p13, %p100_p12 }
  0x1e   :  { %p103_p1 = pnand %p102_p0, %p96_p11 }
  0x20   :  { %106 = shalt.err (!%p103_p1)
}
  0x21   :  { %29 = dma.hbm_to_vmem [thread:$0]  %s190_s1, 256, %s27_s12, [#allocation6]  }
  0x22   :  { %129 = dma.done.wait [#allocation3], 256  }
  0x23   :  { %130 = vsyncadd [#allocation3], 4294967040 }
  0x24   :  { %131 = dma.done.wait [#allocation6], 256  }
  0x25   :  { %132 = vsyncadd [#allocation6], 4294967040  ;;  %s137_s4 = smov [#allocation7]   ;;  %v36_v0 = vld [vmem:[#allocation2] sm:$0xff]  ;;  %v38_v1 = vld [vmem:[#allocation5] sm:$0xff] }
  0x26   :  { %s50_s5 = sshll.u32 %s137_s4, 4  ;;  %v37_v2 = vld [vmem:[#allocation2 + $0x8] sm:$0xff]  ;;  %v40_v3 = vadd.f32 %v38_v1, %v36_v0  ;;  %v39_v4 = vld [vmem:[#allocation5 + $0x8] sm:$0xff]  ;;  %s51_s5 = int_to_ptr.vmem [resolvable:$true] %s50_s5 }
  0x27   :  { %v41_v5 = vadd.f32 %v39_v4, %v37_v2  ;;  %s107_s6 = scalar_lea.vmem %s51_s5, 256  ;;  %p112_p3 = scmp.lt.s32.totalorder %s51_s5, %s51_s5 }
  0x28   :  { %42 = vst [vmem:[#allocation7] sm:$0xff] %v40_v3  ;;  %p108_p2 = scmp.ne.s32.totalorder %s51_s5, %s107_s6  ;;  %p113_p4 = scmp.lt.s32.totalorder %s107_s6, %s107_s6 }
  0x29   :  { %43 = vst [vmem:[#allocation7 + $0x8] sm:$0xff] %v41_v5 }
  0x2a   :  { %p114_p5 = por %p113_p4, %p112_p3 }
  0x2c   :  { %p115_p6 = pnand %p114_p5, %p108_p2 }
  0x2e   :  { %118 = shalt.err (!%p115_p6)
}
  0x2f   :  { %s119_s8 = scalar_lea.hbm %s191_s2, 256 }
  0x30   :  { %p120_p7 = scmp.ne.s32.totalorder %s191_s2, %s119_s8  ;;  %p123_p8 = scmp.lt.u32.totalorder %s119_s8, %s191_s2 }
  0x32   :  { %p125_p9 = pnand %p123_p8, %p120_p7 }
  0x34   :  { %128 = shalt.err (!%p125_p9)
}
  0x35   :  { %53 = dma.vmem_to_hbm [thread:$0]  %s51_s5, 256, %s191_s2, [#allocation4]  }
  0x36   :  { %133 = dma.done.wait [#allocation4], 256  }
  0x37   :  { %134 = vsyncadd [#allocation4], 4294967040 }
  0x38   :  { %57 = vsyncpa [#allocation3], 1 }
  0x39   :  { %58 = vsyncpa [#allocation6], 1 }
  0x3a   :  { %59 = vsyncpa [#allocation4], 1 }

</bundles_post_ra>
